<compile_context>
chip_gen: v7x
topology: tpu7x:2x2x1
jax: 0.10.0
libtpu: 0.0.40
codegen_flags: <defaults>
</compile_context>

<pallas_src>
import jax
import jax.numpy as jnp
from jax import lax
from jax.experimental import pallas as pl
from jax.experimental.pallas import tpu as pltpu


def _typedict_gather_kernel(ids_ref, table_ref, out_ref):
    """out_ref[r, g*D:(g+1)*D] = table[ids[r, g]] via one-hot @ table (MXU)."""
    table = table_ref[...]                       # (T, D), VMEM-resident
    ids = ids_ref[...]                           # (rows_tile, G) int32
    rows_tile, G = ids.shape
    T = table.shape[0]

    cols = []
    for g in range(G):                           # static unroll, G <= 16
        # One-hot row selector for the g-th edge packed into this output row.
        sel = (ids[:, g:g + 1] ==
               lax.broadcasted_iota(jnp.int32, (rows_tile, T), 1)
               ).astype(table.dtype)             # (rows_tile, T)
        cols.append(jnp.dot(sel, table, preferred_element_type=jnp.float32))

    res = cols[0] if G == 1 else jnp.concatenate(cols, axis=1)   # (rows_tile, G*D)
    out_ref[...] = res.astype(out_ref.dtype)


def embedding_lookup_pallas(edge_types, table, *, edges_per_tile=2048):
    """Embedding gather: out[e, :] = table[edge_types[e], :]."""
    E = edge_types.shape[0]
    T, D = table.shape
    dtype = table.dtype
    itemsize = jnp.dtype(dtype).itemsize
    if E == 0:
        return jnp.zeros((0, D), dtype)

    # Fold G consecutive edges into one 128-lane output row when D divides 128,
    # so output stores / HBM writeback are lane-dense (unmasked vst).
    G = 128 // D if (D < 128 and 128 % D == 0) else 1
    E_pad = pl.cdiv(E, G) * G
    rows = E_pad // G

    ids = edge_types.astype(jnp.int32)
    if E_pad != E:
        ids = jnp.pad(ids, (0, E_pad - E))       # padded ids -> garbage rows, sliced below
    ids2 = ids.reshape(rows, G)                  # row-major fold (free reshape)

    # Rows per grid step: ~edges_per_tile edges, multiple of 8 sublanes,
    # capped by the problem size and by a modest VMEM budget for the
    # double-buffered output tile.
    rows_tile = max(8, (edges_per_tile // G) // 8 * 8)
    vmem_budget = 8 * 1024 * 1024
    max_rows = max(8, (vmem_budget // (2 * G * D * itemsize)) // 8 * 8)
    rows_tile = min(rows_tile, max_rows, pl.cdiv(rows, 8) * 8)
    grid = (pl.cdiv(rows, rows_tile),)

    out = pl.pallas_call(
        _typedict_gather_kernel,
        out_shape=jax.ShapeDtypeStruct((rows, G * D), dtype),
        grid=grid,
        in_specs=[
            # Edge-type ids: blocked VMEM int32 tile (tile-sized SMEM/VMEM use,
            # independent of E).
            pl.BlockSpec((rows_tile, G), lambda i: (i, 0)),
            # Embedding table: full array, constant index_map -> loaded once,
            # stays resident in VMEM across all grid steps.
            pl.BlockSpec((T, D), lambda i: (0, 0)),
        ],
        out_specs=pl.BlockSpec((rows_tile, G * D), lambda i: (i, 0)),
        compiler_params=pltpu.CompilerParams(
            dimension_semantics=("parallel",)),   # edge tiles are independent
        cost_estimate=pl.CostEstimate(
            flops=2 * E_pad * T * D,
            transcendentals=0,
            bytes_accessed=E_pad * D * itemsize + T * D * itemsize + E_pad * 4),
    )(ids2, table)

    out = out.reshape(E_pad, D)                  # contiguous row-major -> free
    if E_pad != E:
        out = out[:E]                            # only when E % G != 0
    return out


class TypeDictEdgeEncoder:
    """JAX/Pallas port of the PyTorch TypeDictEdgeEncoder."""

    def __init__(self, emb_dim, num_types, key, pad_to_full_graph=False):
        if num_types < 1:
            raise ValueError(f"Invalid 'edge_encoder_num_types': {num_types}")
        # torch.nn.Embedding default init: N(0, 1)
        self.emb_table = jax.random.normal(
            key, (num_types, emb_dim), dtype=jnp.float32)
        self.pad_to_full_graph = pad_to_full_graph
        self.fill_value = 0.0
        self.padding = jnp.ones((1, emb_dim), jnp.float32) * self.fill_value

    def __call__(self, batch):
        # batch: dict with 'edge_index' [2, E] int32, 'edge_attr' [E] int32,
        #        'batch' [N] int32 (node -> graph assignment)
        edge_attr = embedding_lookup_pallas(batch["edge_attr"], self.emb_table)
        out_idx = batch["edge_index"]
        out_val = edge_attr
        if self.pad_to_full_graph:
            # TODO(synk): full_edge_index + torch_sparse.coalesce produce a
            # data-dependent (dynamic) number of output edges; no clean
            # static-shape Pallas equivalent, so this branch is not ported.
            raise NotImplementedError("pad_to_full_graph not supported")
        batch = dict(batch)
        batch["edge_index"] = out_idx
        batch["edge_attr"] = out_val
        return batch


if __name__ == "__main__":
    key = jax.random.PRNGKey(0)
    k_emb, k_type = jax.random.split(key)

    num_types = 8
    emb_dim = 32
    num_nodes = 6
    num_edges = 12

    encoder = TypeDictEdgeEncoder(emb_dim, num_types, k_emb,
                                  pad_to_full_graph=False)

    edge_types = jax.random.randint(k_type, (num_edges,), 0, num_types,
                                    dtype=jnp.int32)
    src = jnp.arange(num_edges, dtype=jnp.int32) % num_nodes
    dst = (jnp.arange(num_edges, dtype=jnp.int32) + 1) % num_nodes
    batch = {
        "edge_index": jnp.stack([src, dst], axis=0),   # [2, E]
        "edge_attr": edge_types,                       # [E] int type ids
        "batch": jnp.zeros((num_nodes,), jnp.int32),   # single graph
    }

    out = encoder(batch)
    jax.block_until_ready(out["edge_attr"])

    # Reference check against plain gather.
    ref = jnp.take(encoder.emb_table, edge_types, axis=0)
    assert out["edge_attr"].shape == (num_edges, emb_dim)
    assert jnp.allclose(out["edge_attr"], ref, atol=1e-6)

    print("KERNEL_OK")
</pallas_src>

<mosaic_0001>
module attributes {stable_mosaic.version = 11 : i64} {
  func.func @_typedict_gather_kernel(%arg0: i32, %arg1: memref<8x4xi32, #tpu.memory_space<vmem>>, %arg2: memref<8x32xf32, #tpu.memory_space<vmem>>, %arg3: memref<8x128xf32, #tpu.memory_space<vmem>>) attributes {dimension_semantics = [#tpu.dimension_semantics<parallel>], iteration_bounds = array<i64: 1>, scalar_prefetch = 0 : i64, scratch_operands = 0 : i64, tpu.core_type = #tpu.core_type<tc>, window_params = [{transform_indices = @transform_0, window_bounds = array<i64: 8, 4>}, {pipeline_mode = #tpu.pipeline_mode<synchronous>, transform_indices = @transform_1, window_bounds = array<i64: 8, 32>}, {transform_indices = @transform_2, window_bounds = array<i64: 8, 128>}]} {
    %c0 = arith.constant 0 : index
    %c0_0 = arith.constant 0 : index
    %0 = vector.load %arg2[%c0, %c0_0] : memref<8x32xf32, #tpu.memory_space<vmem>>, vector<8x32xf32>
    %c0_1 = arith.constant 0 : index
    %c0_2 = arith.constant 0 : index
    %1 = vector.load %arg1[%c0_1, %c0_2] : memref<8x4xi32, #tpu.memory_space<vmem>>, vector<8x4xi32>
    %2 = vector.extract_strided_slice %1 {offsets = [0, 0], sizes = [8, 1], strides = [1, 1]} : vector<8x4xi32> to vector<8x1xi32>
    %3 = tpu.iota {dimensions = array<i32: 1>} : vector<8x8xi32>
    %4 = vector.broadcast %2 : vector<8x1xi32> to vector<8x8xi32>
    %5 = arith.cmpi eq, %4, %3 : vector<8x8xi32>
    %6 = arith.extui %5 : vector<8x8xi1> to vector<8x8xi32>
    %7 = arith.sitofp %6 : vector<8x8xi32> to vector<8x8xf32>
    %cst = arith.constant dense<0.000000e+00> : vector<8x32xf32>
    %8 = tpu.matmul %7, %0, %cst {dimension_numbers = #tpu.dot_dimension_numbers<[1], [0], [0], [1], [0, 0, 1, 1], [], []>} : vector<8x8xf32>, vector<8x32xf32>, vector<8x32xf32> -> vector<8x32xf32>
    %9 = vector.extract_strided_slice %1 {offsets = [0, 1], sizes = [8, 1], strides = [1, 1]} : vector<8x4xi32> to vector<8x1xi32>
    %10 = tpu.iota {dimensions = array<i32: 1>} : vector<8x8xi32>
    %11 = vector.broadcast %9 : vector<8x1xi32> to vector<8x8xi32>
    %12 = arith.cmpi eq, %11, %10 : vector<8x8xi32>
    %13 = arith.extui %12 : vector<8x8xi1> to vector<8x8xi32>
    %14 = arith.sitofp %13 : vector<8x8xi32> to vector<8x8xf32>
    %cst_3 = arith.constant dense<0.000000e+00> : vector<8x32xf32>
    %15 = tpu.matmul %14, %0, %cst_3 {dimension_numbers = #tpu.dot_dimension_numbers<[1], [0], [0], [1], [0, 0, 1, 1], [], []>} : vector<8x8xf32>, vector<8x32xf32>, vector<8x32xf32> -> vector<8x32xf32>
    %16 = vector.extract_strided_slice %1 {offsets = [0, 2], sizes = [8, 1], strides = [1, 1]} : vector<8x4xi32> to vector<8x1xi32>
    %17 = tpu.iota {dimensions = array<i32: 1>} : vector<8x8xi32>
    %18 = vector.broadcast %16 : vector<8x1xi32> to vector<8x8xi32>
    %19 = arith.cmpi eq, %18, %17 : vector<8x8xi32>
    %20 = arith.extui %19 : vector<8x8xi1> to vector<8x8xi32>
    %21 = arith.sitofp %20 : vector<8x8xi32> to vector<8x8xf32>
    %cst_4 = arith.constant dense<0.000000e+00> : vector<8x32xf32>
    %22 = tpu.matmul %21, %0, %cst_4 {dimension_numbers = #tpu.dot_dimension_numbers<[1], [0], [0], [1], [0, 0, 1, 1], [], []>} : vector<8x8xf32>, vector<8x32xf32>, vector<8x32xf32> -> vector<8x32xf32>
    %23 = vector.extract_strided_slice %1 {offsets = [0, 3], sizes = [8, 1], strides = [1, 1]} : vector<8x4xi32> to vector<8x1xi32>
    %24 = tpu.iota {dimensions = array<i32: 1>} : vector<8x8xi32>
    %25 = vector.broadcast %23 : vector<8x1xi32> to vector<8x8xi32>
    %26 = arith.cmpi eq, %25, %24 : vector<8x8xi32>
    %27 = arith.extui %26 : vector<8x8xi1> to vector<8x8xi32>
    %28 = arith.sitofp %27 : vector<8x8xi32> to vector<8x8xf32>
    %cst_5 = arith.constant dense<0.000000e+00> : vector<8x32xf32>
    %29 = tpu.matmul %28, %0, %cst_5 {dimension_numbers = #tpu.dot_dimension_numbers<[1], [0], [0], [1], [0, 0, 1, 1], [], []>} : vector<8x8xf32>, vector<8x32xf32>, vector<8x32xf32> -> vector<8x32xf32>
    %30 = tpu.concatenate %8, %15, %22, %29 in 1 : vector<8x32xf32>, vector<8x32xf32>, vector<8x32xf32>, vector<8x32xf32> -> vector<8x128xf32>
    %c0_6 = arith.constant 0 : index
    %c0_7 = arith.constant 0 : index
    %31 = vector.load %arg3[%c0_6, %c0_7] : memref<8x128xf32, #tpu.memory_space<vmem>>, vector<8x128xf32>
    tpu.vector_store %arg3[%c0_6, %c0_7], %30 {strides = array<i32>} : memref<8x128xf32, #tpu.memory_space<vmem>>, vector<8x128xf32>,
    return
  }
  func.func @transform_0(%arg0: i32) -> (i32, i32) {
    %c0_i32 = arith.constant 0 : i32
    %c0_i32_0 = arith.constant 0 : i32
    return %arg0, %c0_i32 : i32, i32
  }
  func.func @transform_1(%arg0: i32) -> (i32, i32) {
    %c0_i32 = arith.constant 0 : i32
    %c0_i32_0 = arith.constant 0 : i32
    %c0_i32_1 = arith.constant 0 : i32
    return %c0_i32, %c0_i32_0 : i32, i32
  }
  func.func @transform_2(%arg0: i32) -> (i32, i32) {
    %c0_i32 = arith.constant 0 : i32
    %c0_i32_0 = arith.constant 0 : i32
    return %arg0, %c0_i32 : i32, i32
  }
}

</mosaic_0001>

<bundles_post_ra>
// kernel: tpu_custom_call.1
= control target key start
LH: loop header
LB: loop body
LE: loop exit
PB: predicated region body
PF: predicated region fallthrough
CT: control target
= control target key end

     0   :  { %7 = vsyncpa [#allocation3], 0  ;;  %s601_s0 = inlined_call_operand.hbm [shape: s32[3,4], index: 0, kind: input, shape index: {}]   ;;  %s602_s1 = inlined_call_operand.hbm [shape: f32[8,32], index: 1, kind: input, shape index: {}]   ;;  %s603_s2 = inlined_call_operand.hbm [shape: f32[3,128], index: 2, kind: output, shape index: {}]  }
   0x1   :  { %8 = vsyncpa [#allocation6], 0 }
   0x2   :  { %9 = vsyncpa [#allocation4], 0 }
   0x3   :  { %14 = vsyncadd [#allocation3], 64  ;;  %s522_s9 = smov [#allocation2]   ;;  %s450_s13 = scalar_lea.hbm %s601_s0, 64 }
   0x4   :  { %s15_s10 = sshll.u32 %s522_s9, 4  ;;  %p451_p0 = scmp.ne.s32.totalorder %s601_s0, %s450_s13  ;;  %s16_s10 = int_to_ptr.vmem [resolvable:$true] %s15_s10 }
   0x5   :  { %p454_p1 = scmp.lt.u32.totalorder %s450_s13, %s601_s0 }
   0x7   :  { %p456_p2 = pnand %p454_p1, %p451_p0 }
   0x9   :  { %459 = shalt.err (!%p456_p2)
}
   0xa   :  { %s460_s18 = scalar_lea.vmem %s16_s10, 64  ;;  %s464_s19 = scalar_lea.vmem %s16_s10, 128 }
   0xb   :  { %p461_p3 = scmp.ne.s32.totalorder %s16_s10, %s460_s18  ;;  %p465_p4 = scmp.lt.s32.totalorder %s16_s10, %s16_s10 }
   0xc   :  { %p466_p5 = scmp.lt.s32.totalorder %s464_s19, %s460_s18 }
   0xe   :  { %p467_p6 = por %p466_p5, %p465_p4 }
  0x10   :  { %p468_p7 = pnand %p467_p6, %p461_p3 }
  0x12   :  { %471 = shalt.err (!%p468_p7)
}
  0x13   :  { %s523_s20 = smov 64   ;;  %s524_s21 = smov 4  }
  0x14   :  { %21 = dma.hbm_to_vmem [thread:$0]  %s601_s0, 64, %s16_s10, [#allocation3], %s523_s20, %s523_s20, %s524_s21  }
  0x15   :  { %s525_s24 = smov [#allocation5]   ;;  %s472_s28 = scalar_lea.hbm %s602_s1, 128 }
  0x16   :  { %s28_s25 = sshll.u32 %s525_s24, 4  ;;  %p473_p8 = scmp.ne.s32.totalorder %s602_s1, %s472_s28  ;;  %s29_s25 = int_to_ptr.vmem [resolvable:$true] %s28_s25 }
  0x17   :  { %p476_p9 = scmp.lt.u32.totalorder %s472_s28, %s602_s1 }
  0x19   :  { %p478_p10 = pnand %p476_p9, %p473_p8 }
  0x1b   :  { %481 = shalt.err (!%p478_p10)
}
  0x1c   :  { %s482_s5 = scalar_lea.vmem %s29_s25, 128  ;;  %p487_p12 = scmp.lt.s32.totalorder %s29_s25, %s29_s25 }
  0x1d   :  { %p483_p11 = scmp.ne.s32.totalorder %s29_s25, %s482_s5  ;;  %p488_p13 = scmp.lt.s32.totalorder %s482_s5, %s482_s5 }
  0x1f   :  { %p489_p0 = por %p488_p13, %p487_p12 }
  0x21   :  { %p490_p1 = pnand %p489_p0, %p483_p11 }
  0x23   :  { %493 = shalt.err (!%p490_p1)
}
  0x24   :  { %31 = dma.hbm_to_vmem [thread:$0]  %s602_s1, 128, %s29_s25, [#allocation6]  }
  0x25   :  { %516 = dma.done.wait [#allocation3], 128  }
  0x26   :  { %517 = vsyncadd [#allocation3], 4294967168 }
  0x27   :  { %518 = dma.done.wait [#allocation6], 128  }
  0x28   :  { %519 = vsyncadd [#allocation6], 4294967168  ;;  %v526_v0 = vmov 0   ;;  %v527_v1 = vmov 2   ;;  %v528_v2 = vmov 0.0   ;;  %v39_v3 = vld [vmem:[#allocation2] sm:$0xff]  ;;  %v40_v7 = vlaneseq }
  0x29   :  { %445 = vset.pattern.permute.xlu0 %v526_v0  ;;  %447 = vset.pattern.permute.xlu1 %v527_v1  ;;  %v38_v4 = vld [vmem:[#allocation5] sm:$0xff]  ;;  %vm529_vm0 = vmmov 0   ;;  %v530_v5 = vmov 1   ;;  %v531_v6 = vmov 3   ;;  %vm48_vm1 = vcmask 64512   ;;  %s532_s1 = smov 32  }
  0x2a   :  { %412 = vmatprep.subr.mxu0 %v528_v2  ;;  %417 = vmatprep.subr.mxu1 %v528_v2  ;;  %v41_v8 = vand.u32 127, %v40_v7  ;;  %s533_s7 = smov 96   ;;  %vm371_vm6 = vcmask 261120   ;;  %vm373_vm7 = vcmask 523264   ;;  %vm375_vm8 = vcmask 785408  }
  0x2b   :  { %43 = vperm.xlu0 %445, %v39_v3   ;;  %202 = vperm.xlu1 %447, %v39_v3  }
  0x2c   :  { %413 = vmatpush3.msra.mxu0 %v38_v4  ;;  %414 = vmatprep.mubr.msk.f32.mxu0 %vm529_vm0, %v528_v2 }
  0x2d   :  { %422 = vmatprep.subr.mxu0 %v528_v2  ;;  %418 = vmatpush3.msra.mxu1 %v38_v4 }
  0x2e   :  { %419 = vmatprep.mubr.msk.f32.mxu1 %vm529_vm0, %v528_v2  ;;  %427 = vmatprep.subr.mxu1 %v528_v2 }
  0x2f   :  { %446 = vset.pattern.permute.xlu0 %v530_v5  ;;  %448 = vset.pattern.permute.xlu1 %v531_v6 }
  0x30   :  { %123 = vperm.xlu0 %446, %v39_v3   ;;  %281 = vperm.xlu1 %448, %v39_v3  }
  0x34   :  { %449 = vset.pattern.permute.xlu0 %v531_v6 }
  0xaa   :  { %v44_v9 = vpop.permute.xlu0 %43  ;;  %v203_v10 = vpop.permute.xlu1 %202 }
  0xab   :  { %vm45_vm2 = vcmp.eq.s32.totalorder %v44_v9, %v41_v8  ;;  %vm204_vm3 = vcmp.eq.s32.totalorder %v203_v10, %v41_v8 }
  0xac   :  { %v396_v11 = vsel %vm45_vm2, 1.0, %v528_v2  ;;  %v400_v12 = vsel %vm204_vm3, 1.0, %v528_v2 }
  0xad   :  { %415 = vmatmul.mubr.msk.f32.vlgmr.msra.gmra.mrb[0].mxu0 %vm48_vm1, %v396_v11 }
  0xae   :  { %423 = vmatpush3.msra.mxu0 %v38_v4  ;;  %424 = vmatprep.mubr.msk.f32.mxu0 %vm529_vm0, %v528_v2 }
  0xaf   :  { %v124_v13 = vpop.permute.xlu0 %123  ;;  %v282_v14 = vpop.permute.xlu1 %281 }
  0xb0   :  { %vm125_vm4 = vcmp.eq.s32.totalorder %v124_v13, %v41_v8  ;;  %vm283_vm5 = vcmp.eq.s32.totalorder %v282_v14, %v41_v8 }
  0xb1   :  { %v398_v15 = vsel %vm125_vm4, 1.0, %v528_v2  ;;  %425 = vmatmul.mubr.msk.f32.vlgmr.msra.gmra.mrb[2].mxu0 %vm48_vm1, %v400_v12  ;;  %v402_v16 = vsel %vm283_vm5, 1.0, %v528_v2 }
  0xb2   :  { %420 = vmatmul.mubr.msk.f32.vlgmr.msra.gmra.mrb[0].mxu1 %vm48_vm1, %v398_v15 }
  0xb3   :  { %428 = vmatpush3.msra.mxu1 %v38_v4  ;;  %429 = vmatprep.mubr.msk.f32.mxu1 %vm529_vm0, %v528_v2 }
  0xb6   :  { %430 = vmatmul.mubr.msk.f32.vlgmr.msra.gmra.mrb[2].mxu1 %vm48_vm1, %v402_v16 }
 0x180   :  { %v118_v17 = vpop.f32.mrb[0].mxu0 }
 0x181   :  { %v416_v18 = vpop.f32.mrb[1].mxu0 }
 0x184   :  { %v276_v19 = vpop.f32.mrb[2].mxu0 }
 0x185   :  { %v197_v20 = vpop.f32.mrb[0].mxu1  ;;  %364 = vrot.lane.b32.xlu0 %v276_v19, %s523_s20  ;;  %v426_v21 = vpop.f32.mrb[3].mxu0 }
 0x186   :  { %360 = vrot.lane.b32.xlu1 %v197_v20, %s532_s1  ;;  %v421_v22 = vpop.f32.mrb[1].mxu1 }
 0x189   :  { %v355_v23 = vpop.f32.mrb[2].mxu1 }
 0x18a   :  { %368 = vrot.lane.b32.xlu1 %v355_v23, %s533_s7  ;;  %v431_v24 = vpop.f32.mrb[3].mxu1 }
 0x1f7   :  { %v365_v27 = vpop.permute.xlu0 %364 }
 0x1f8   :  { %v361_v25 = vpop.permute.xlu1 %360 }
 0x1f9   :  { %v372_v26 = vsel %vm371_vm6, %v118_v17, %v361_v25 }
 0x1fa   :  { %v374_v29 = vsel %vm373_vm7, %v372_v26, %v365_v27 }
 0x1fc   :  { %v369_v28 = vpop.permute.xlu1 %368 }
 0x1fd   :  { %v376_v30 = vsel %vm375_vm8, %v374_v29, %v369_v28 }
 0x1fe   :  { %377 = vst [vmem:[#allocation7] sm:$0xff] %v376_v30 }
 0x1ff   :  { %382 = vsyncadd [#allocation4], 64  ;;  %s534_s8 = smov [#allocation7]  }
 0x200   :  { %s383_s9 = sshll.u32 %s534_s8, 4  ;;  %s384_s9 = int_to_ptr.vmem [resolvable:$true] %s383_s9 }
 0x201   :  { %s494_s10 = scalar_lea.vmem %s384_s9, 64  ;;  %s498_s11 = scalar_lea.vmem %s384_s9, 128 }
 0x202   :  { %p495_p2 = scmp.ne.s32.totalorder %s384_s9, %s494_s10  ;;  %p499_p3 = scmp.lt.s32.totalorder %s384_s9, %s384_s9 }
 0x203   :  { %p500_p4 = scmp.lt.s32.totalorder %s498_s11, %s494_s10 }
 0x205   :  { %p501_p5 = por %p500_p4, %p499_p3 }
 0x207   :  { %p502_p6 = pnand %p501_p5, %p495_p2 }
 0x209   :  { %505 = shalt.err (!%p502_p6)
}
 0x20a   :  { %s506_s14 = scalar_lea.hbm %s603_s2, 64 }
 0x20b   :  { %p507_p7 = scmp.ne.s32.totalorder %s603_s2, %s506_s14  ;;  %p510_p8 = scmp.lt.u32.totalorder %s506_s14, %s603_s2 }
 0x20d   :  { %p512_p9 = pnand %p510_p8, %p507_p7 }
 0x20f   :  { %515 = shalt.err (!%p512_p9)
}
 0x210   :  { %389 = dma.vmem_to_hbm [thread:$0]  %s384_s9, 64, %s603_s2, [#allocation4], %s523_s20, %s523_s20, %s524_s21  }
 0x211   :  { %520 = dma.done.wait [#allocation4], 128  }
 0x212   :  { %521 = vsyncadd [#allocation4], 4294967168 }
 0x213   :  { %393 = vsyncpa [#allocation3], 1 }
 0x214   :  { %394 = vsyncpa [#allocation6], 1 }
 0x215   :  { %395 = vsyncpa [#allocation4], 1 }

</bundles_post_ra>
